<compile_context>
chip_gen: v7x
topology: tpu7x:2x2x1
jax: 0.10.0
libtpu: 0.0.40
codegen_flags: <defaults>
</compile_context>

<pallas_src>
import functools

import jax
import jax.numpy as jnp
from jax.experimental import pallas as pl
from jax.experimental.pallas import tpu as pltpu


def _downsample_kernel(stride, x_ref, w_ref, b_ref, o_ref):
    """One (batch, output-row-block) tile.

    x_ref: (1, C_in, THo, 1, 1, W)  VMEM -- only the parity-0 input row of each
                                            stride-group was DMA'd from HBM.
    w_ref: (C_out, C_in)            SMEM -- 1x1 conv weights, f32 scalars.
    b_ref: (C_out,)                 SMEM -- bias, f32 scalars.
    o_ref: (1, C_out, THo, Wo)      VMEM -- NCHW output tile.
    """
    _, c_in, tho, _, _, w = x_ref.shape
    c_out = o_ref.shape[1]
    wo = o_ref.shape[3]

    x = x_ref[0, :, :, 0, 0, :]                            # (C_in, THo, W)

    # Column-parity (stride-W) selection matrix built in-kernel from iota:
    # grid-constant, exact 0/1 values, no HBM read, no input buffer.
    rr = jax.lax.broadcasted_iota(jnp.int32, (w, wo), 0)
    cc = jax.lax.broadcasted_iota(jnp.int32, (w, wo), 1)
    sel = (rr == stride * cc).astype(x.dtype)

    # Single fused MXU matmul subsamples every (channel, row) at once on the
    # otherwise-idle MXU; f32 accumulation.
    xs = jnp.dot(x.reshape(c_in * tho, w), sel,
                 preferred_element_type=jnp.float32)       # (C_in*THo, Wo)
    xs = xs.reshape(c_in, tho, wo)

    # Tiny channel mix (C_in -> C_out) on the VPU with f32 SMEM scalar weights.
    # TODO(synk): for ResNet-scale channel counts (>= 64) route this channel
    # mix through the MXU (weights in VMEM) instead of unrolled VPU MACs.
    for co in range(c_out):
        acc = w_ref[co, 0] * xs[0]
        for ci in range(1, c_in):
            acc = acc + w_ref[co, ci] * xs[ci]
        o_ref[0, co] = (acc + b_ref[co]).astype(o_ref.dtype)


def _round_up(v, m):
    return -(-v // m) * m


def _choose_row_block(ho, n, c_in, c_out, w, wo, itemsize,
                      budget_bytes=8 * 1024 * 1024):
    """Largest 8-aligned output-row tile fitting the per-block VMEM budget.

    Accounts for (8,128) tile padding of the (1,1,W) input slices and for
    double buffering, and ensures >= 2 grid programs when the row count allows
    a split so both v7x TensorCores get work.
    """
    in_row = c_in * 8 * _round_up(w, 128) * itemsize      # padded (1,W) tile / channel
    out_row = c_out * _round_up(wo, 128) * itemsize
    per_row = 2 * (in_row + out_row)                       # double-buffered in + out
    max_rows = max(1, budget_bytes // max(1, per_row))

    if ho <= max_rows:
        tho = ho                                           # full dim: always layout-legal
    else:
        tho = max(8, (max_rows // 8) * 8)                  # sublane-aligned

    # v7x megacore: make sure at least 2 grid programs exist when possible.
    if n * pl.cdiv(ho, tho) < 2 and ho >= 16:
        tho = _round_up(pl.cdiv(ho, 2), 8)
    return min(tho, ho)


def my_downsampling_sc(x, weight, bias, stride=2):
    """Forward of My_DownSampling_SC (kernel_size=(1,1), padding=(0,0)).

    Args:
      x:      (N, C_in, H, W) NCHW
      weight: (C_out, C_in, 1, 1)
      bias:   (C_out,)
    Returns:
      (conv_out, x) with conv_out (N, C_out, Ho, Wo) in NCHW.
    """
    n, c_in, h, w = x.shape
    c_out = weight.shape[0]
    ho = (h - 1) // stride + 1
    wo = (w - 1) // stride + 1

    # Pad H up to a multiple of `stride` (only when H % stride != 0; the padded
    # rows are parity-1 so they are never DMA'd by the BlockSpec below).
    # TODO(synk): handle the ragged odd-H tail in-kernel instead of a padded copy.
    h_pad = ho * stride
    xp = x if h_pad == h else jnp.pad(x, ((0, 0), (0, 0), (0, h_pad - h), (0, 0)))

    # FREE metadata reshape pairing each output row with its stride-group of
    # input rows.  The input BlockSpec fixes the stride axis at block index 0,
    # so only the even input rows are DMA'd; odd rows never leave HBM.  The
    # trailing unit dim keeps the block's last two dims equal to the full array
    # dims (TPU (8,128) tiling rule).
    x6 = xp.reshape(n, c_in, ho, stride, 1, w)

    # Keep conv parameters in f32 (SMEM scalars are 32-bit anyway); accumulate
    # in f32 and cast once at the final store.
    w2d = weight.reshape(c_out, c_in).astype(jnp.float32)
    b1d = bias.reshape(c_out).astype(jnp.float32)

    tho = _choose_row_block(ho, n, c_in, c_out, w, wo, x.dtype.itemsize)
    grid = (n, pl.cdiv(ho, tho))

    kernel = functools.partial(_downsample_kernel, stride)

    flops = 2 * n * c_in * ho * w * wo + 2 * n * ho * wo * c_in * c_out
    bytes_accessed = (
        x.dtype.itemsize * n * c_in * ho * w          # even input rows only
        + x.dtype.itemsize * n * c_out * ho * wo      # output
        + 4 * (c_out * c_in + c_out)                  # f32 params
    )

    conv_out = pl.pallas_call(
        kernel,
        out_shape=jax.ShapeDtypeStruct((n, c_out, ho, wo), x.dtype),
        grid=grid,
        in_specs=[
            pl.BlockSpec((1, c_in, tho, 1, 1, w),
                         lambda b, i: (b, 0, i, 0, 0, 0)),
            pl.BlockSpec(memory_space=pltpu.MemorySpace.SMEM),  # weights (f32)
            pl.BlockSpec(memory_space=pltpu.MemorySpace.SMEM),  # bias (f32)
        ],
        out_specs=pl.BlockSpec((1, c_out, tho, wo), lambda b, i: (b, 0, i, 0)),
        compiler_params=pltpu.CompilerParams(
            dimension_semantics=("parallel", "parallel"),
            vmem_limit_bytes=32 * 1024 * 1024,
        ),
        cost_estimate=pl.CostEstimate(
            flops=flops, transcendentals=0, bytes_accessed=bytes_accessed
        ),
    )(x6, w2d, b1d)

    # TODO(synk): for very small Wo (< ~32) a lane-dense (N, C_out, Ho*Wo)
    # output layout would avoid masked vst stores (biggest relative win on
    # v5e); left out because it needs an in-kernel relayout we cannot measure.
    return conv_out, x


if __name__ == "__main__":
    key = jax.random.PRNGKey(0)
    kx, kw, kb = jax.random.split(key, 3)

    N, C_in, C_out, H, W = 2, 4, 8, 16, 16
    x = jax.random.normal(kx, (N, C_in, H, W), dtype=jnp.float32)
    weight = jax.random.normal(kw, (C_out, C_in, 1, 1), dtype=jnp.float32) * 0.1
    bias = jax.random.normal(kb, (C_out,), dtype=jnp.float32) * 0.1

    fwd = jax.jit(functools.partial(my_downsampling_sc, stride=2))
    conv_out, passthrough = fwd(x, weight, bias)
    jax.block_until_ready(conv_out)
    jax.block_until_ready(passthrough)

    # Reference: plain-JAX 1x1 stride-2 conv.
    ref = jnp.einsum(
        "nchw,oc->nohw", x[:, :, ::2, ::2], weight.reshape(C_out, C_in)
    ) + bias.reshape(1, C_out, 1, 1)
    assert conv_out.shape == (N, C_out, H // 2, W // 2)
    assert passthrough.shape == x.shape
    assert jnp.allclose(conv_out, ref, atol=1e-5, rtol=1e-5)
    assert jnp.array_equal(passthrough, x)

    print("KERNEL_OK")
</pallas_src>

<mosaic_0001>
module attributes {stable_mosaic.version = 11 : i64} {
  func.func @_downsample_kernel(%arg0: i32, %arg1: i32, %arg2: memref<1x4x8x1x1x16xf32, #tpu.memory_space<vmem>>, %arg3: memref<8x4xf32, #tpu.memory_space<smem>>, %arg4: memref<8xf32, #tpu.memory_space<smem>>, %arg5: memref<1x8x8x8xf32, #tpu.memory_space<vmem>>) attributes {dimension_semantics = [#tpu.dimension_semantics<parallel>, #tpu.dimension_semantics<parallel>], iteration_bounds = array<i64: 2, 1>, scalar_prefetch = 0 : i64, scratch_operands = 0 : i64, tpu.core_type = #tpu.core_type<tc>, window_params = [{transform_indices = @transform_0, window_bounds = array<i64: 1, 4, 8, 1, 1, 16>}, {transform_indices = @transform_1, window_bounds = array<i64: 8, 4>}, {transform_indices = @transform_2, window_bounds = array<i64: 8>}, {transform_indices = @transform_3, window_bounds = array<i64: 1, 8, 8, 8>}]} {
    %c0 = arith.constant 0 : index
    %c0_0 = arith.constant 0 : index
    %c0_1 = arith.constant 0 : index
    %c0_2 = arith.constant 0 : index
    %c0_3 = arith.constant 0 : index
    %c0_4 = arith.constant 0 : index
    %0 = vector.load %arg2[%c0, %c0_0, %c0_1, %c0_2, %c0_3, %c0_4] : memref<1x4x8x1x1x16xf32, #tpu.memory_space<vmem>>, vector<1x4x8x1x1x16xf32>
    %1 = vector.shape_cast %0 : vector<1x4x8x1x1x16xf32> to vector<4x8x16xf32>
    %2 = tpu.iota {dimensions = array<i32: 0>} : vector<16x8xi32>
    %3 = tpu.iota {dimensions = array<i32: 1>} : vector<16x8xi32>
    %c2_i32 = arith.constant 2 : i32
    %4 = vector.broadcast %c2_i32 : i32 to vector<16x8xi32>
    %5 = arith.muli %4, %3 : vector<16x8xi32>
    %6 = arith.cmpi eq, %2, %5 : vector<16x8xi32>
    %7 = arith.extui %6 : vector<16x8xi1> to vector<16x8xi32>
    %8 = arith.sitofp %7 : vector<16x8xi32> to vector<16x8xf32>
    %9 = vector.shape_cast %1 : vector<4x8x16xf32> to vector<32x16xf32>
    %cst = arith.constant dense<0.000000e+00> : vector<32x8xf32>
    %10 = tpu.matmul %9, %8, %cst {dimension_numbers = #tpu.dot_dimension_numbers<[1], [0], [0], [1], [0, 0, 1, 1], [], []>} : vector<32x16xf32>, vector<16x8xf32>, vector<32x8xf32> -> vector<32x8xf32>
    %11 = vector.shape_cast %10 : vector<32x8xf32> to vector<4x8x8xf32>
    %c0_5 = arith.constant 0 : index
    %c0_6 = arith.constant 0 : index
    %12 = memref.load %arg3[%c0_5, %c0_6] : memref<8x4xf32, #tpu.memory_space<smem>>
    %13 = vector.extract_strided_slice %11 {offsets = [0, 0, 0], sizes = [1, 8, 8], strides = [1, 1, 1]} : vector<4x8x8xf32> to vector<1x8x8xf32>
    %14 = vector.shape_cast %13 : vector<1x8x8xf32> to vector<8x8xf32>
    %15 = vector.broadcast %12 : f32 to vector<8x8xf32>
    %16 = arith.mulf %15, %14 : vector<8x8xf32>
    %c0_7 = arith.constant 0 : index
    %c1 = arith.constant 1 : index
    %17 = memref.load %arg3[%c0_7, %c1] : memref<8x4xf32, #tpu.memory_space<smem>>
    %18 = vector.extract_strided_slice %11 {offsets = [1, 0, 0], sizes = [1, 8, 8], strides = [1, 1, 1]} : vector<4x8x8xf32> to vector<1x8x8xf32>
    %19 = vector.shape_cast %18 : vector<1x8x8xf32> to vector<8x8xf32>
    %20 = vector.broadcast %17 : f32 to vector<8x8xf32>
    %21 = arith.mulf %20, %19 : vector<8x8xf32>
    %22 = arith.addf %16, %21 : vector<8x8xf32>
    %c0_8 = arith.constant 0 : index
    %c2 = arith.constant 2 : index
    %23 = memref.load %arg3[%c0_8, %c2] : memref<8x4xf32, #tpu.memory_space<smem>>
    %24 = vector.extract_strided_slice %11 {offsets = [2, 0, 0], sizes = [1, 8, 8], strides = [1, 1, 1]} : vector<4x8x8xf32> to vector<1x8x8xf32>
    %25 = vector.shape_cast %24 : vector<1x8x8xf32> to vector<8x8xf32>
    %26 = vector.broadcast %23 : f32 to vector<8x8xf32>
    %27 = arith.mulf %26, %25 : vector<8x8xf32>
    %28 = arith.addf %22, %27 : vector<8x8xf32>
    %c0_9 = arith.constant 0 : index
    %c3 = arith.constant 3 : index
    %29 = memref.load %arg3[%c0_9, %c3] : memref<8x4xf32, #tpu.memory_space<smem>>
    %30 = vector.extract_strided_slice %11 {offsets = [3, 0, 0], sizes = [1, 8, 8], strides = [1, 1, 1]} : vector<4x8x8xf32> to vector<1x8x8xf32>
    %31 = vector.shape_cast %30 : vector<1x8x8xf32> to vector<8x8xf32>
    %32 = vector.broadcast %29 : f32 to vector<8x8xf32>
    %33 = arith.mulf %32, %31 : vector<8x8xf32>
    %34 = arith.addf %28, %33 : vector<8x8xf32>
    %c0_10 = arith.constant 0 : index
    %35 = memref.load %arg4[%c0_10] : memref<8xf32, #tpu.memory_space<smem>>
    %36 = vector.broadcast %35 : f32 to vector<8x8xf32>
    %37 = arith.addf %34, %36 : vector<8x8xf32>
    %c0_11 = arith.constant 0 : index
    %c0_12 = arith.constant 0 : index
    %c0_13 = arith.constant 0 : index
    %c0_14 = arith.constant 0 : index
    %38 = vector.load %arg5[%c0_11, %c0_12, %c0_13, %c0_14] : memref<1x8x8x8xf32, #tpu.memory_space<vmem>>, vector<1x1x8x8xf32>
    %39 = vector.shape_cast %38 : vector<1x1x8x8xf32> to vector<8x8xf32>
    %40 = vector.shape_cast %37 : vector<8x8xf32> to vector<1x1x8x8xf32>
    tpu.vector_store %arg5[%c0_11, %c0_12, %c0_13, %c0_14], %40 {strides = array<i32>} : memref<1x8x8x8xf32, #tpu.memory_space<vmem>>, vector<1x1x8x8xf32>,
    %c1_15 = arith.constant 1 : index
    %c0_16 = arith.constant 0 : index
    %41 = memref.load %arg3[%c1_15, %c0_16] : memref<8x4xf32, #tpu.memory_space<smem>>
    %42 = vector.extract_strided_slice %11 {offsets = [0, 0, 0], sizes = [1, 8, 8], strides = [1, 1, 1]} : vector<4x8x8xf32> to vector<1x8x8xf32>
    %43 = vector.shape_cast %42 : vector<1x8x8xf32> to vector<8x8xf32>
    %44 = vector.broadcast %41 : f32 to vector<8x8xf32>
    %45 = arith.mulf %44, %43 : vector<8x8xf32>
    %c1_17 = arith.constant 1 : index
    %c1_18 = arith.constant 1 : index
    %46 = memref.load %arg3[%c1_17, %c1_18] : memref<8x4xf32, #tpu.memory_space<smem>>
    %47 = vector.extract_strided_slice %11 {offsets = [1, 0, 0], sizes = [1, 8, 8], strides = [1, 1, 1]} : vector<4x8x8xf32> to vector<1x8x8xf32>
    %48 = vector.shape_cast %47 : vector<1x8x8xf32> to vector<8x8xf32>
    %49 = vector.broadcast %46 : f32 to vector<8x8xf32>
    %50 = arith.mulf %49, %48 : vector<8x8xf32>
    %51 = arith.addf %45, %50 : vector<8x8xf32>
    %c1_19 = arith.constant 1 : index
    %c2_20 = arith.constant 2 : index
    %52 = memref.load %arg3[%c1_19, %c2_20] : memref<8x4xf32, #tpu.memory_space<smem>>
    %53 = vector.extract_strided_slice %11 {offsets = [2, 0, 0], sizes = [1, 8, 8], strides = [1, 1, 1]} : vector<4x8x8xf32> to vector<1x8x8xf32>
    %54 = vector.shape_cast %53 : vector<1x8x8xf32> to vector<8x8xf32>
    %55 = vector.broadcast %52 : f32 to vector<8x8xf32>
    %56 = arith.mulf %55, %54 : vector<8x8xf32>
    %57 = arith.addf %51, %56 : vector<8x8xf32>
    %c1_21 = arith.constant 1 : index
    %c3_22 = arith.constant 3 : index
    %58 = memref.load %arg3[%c1_21, %c3_22] : memref<8x4xf32, #tpu.memory_space<smem>>
    %59 = vector.extract_strided_slice %11 {offsets = [3, 0, 0], sizes = [1, 8, 8], strides = [1, 1, 1]} : vector<4x8x8xf32> to vector<1x8x8xf32>
    %60 = vector.shape_cast %59 : vector<1x8x8xf32> to vector<8x8xf32>
    %61 = vector.broadcast %58 : f32 to vector<8x8xf32>
    %62 = arith.mulf %61, %60 : vector<8x8xf32>
    %63 = arith.addf %57, %62 : vector<8x8xf32>
    %c1_23 = arith.constant 1 : index
    %64 = memref.load %arg4[%c1_23] : memref<8xf32, #tpu.memory_space<smem>>
    %65 = vector.broadcast %64 : f32 to vector<8x8xf32>
    %66 = arith.addf %63, %65 : vector<8x8xf32>
    %c0_24 = arith.constant 0 : index
    %c1_25 = arith.constant 1 : index
    %c0_26 = arith.constant 0 : index
    %c0_27 = arith.constant 0 : index
    %67 = vector.load %arg5[%c0_24, %c1_25, %c0_26, %c0_27] : memref<1x8x8x8xf32, #tpu.memory_space<vmem>>, vector<1x1x8x8xf32>
    %68 = vector.shape_cast %67 : vector<1x1x8x8xf32> to vector<8x8xf32>
    %69 = vector.shape_cast %66 : vector<8x8xf32> to vector<1x1x8x8xf32>
    tpu.vector_store %arg5[%c0_24, %c1_25, %c0_26, %c0_27], %69 {strides = array<i32>} : memref<1x8x8x8xf32, #tpu.memory_space<vmem>>, vector<1x1x8x8xf32>,
    %c2_28 = arith.constant 2 : index
    %c0_29 = arith.constant 0 : index
    %70 = memref.load %arg3[%c2_28, %c0_29] : memref<8x4xf32, #tpu.memory_space<smem>>
    %71 = vector.extract_strided_slice %11 {offsets = [0, 0, 0], sizes = [1, 8, 8], strides = [1, 1, 1]} : vector<4x8x8xf32> to vector<1x8x8xf32>
    %72 = vector.shape_cast %71 : vector<1x8x8xf32> to vector<8x8xf32>
    %73 = vector.broadcast %70 : f32 to vector<8x8xf32>
    %74 = arith.mulf %73, %72 : vector<8x8xf32>
    %c2_30 = arith.constant 2 : index
    %c1_31 = arith.constant 1 : index
    %75 = memref.load %arg3[%c2_30, %c1_31] : memref<8x4xf32, #tpu.memory_space<smem>>
    %76 = vector.extract_strided_slice %11 {offsets = [1, 0, 0], sizes = [1, 8, 8], strides = [1, 1, 1]} : vector<4x8x8xf32> to vector<1x8x8xf32>
    %77 = vector.shape_cast %76 : vector<1x8x8xf32> to vector<8x8xf32>
    %78 = vector.broadcast %75 : f32 to vector<8x8xf32>
    %79 = arith.mulf %78, %77 : vector<8x8xf32>
    %80 = arith.addf %74, %79 : vector<8x8xf32>
    %c2_32 = arith.constant 2 : index
    %c2_33 = arith.constant 2 : index
    %81 = memref.load %arg3[%c2_32, %c2_33] : memref<8x4xf32, #tpu.memory_space<smem>>
    %82 = vector.extract_strided_slice %11 {offsets = [2, 0, 0], sizes = [1, 8, 8], strides = [1, 1, 1]} : vector<4x8x8xf32> to vector<1x8x8xf32>
    %83 = vector.shape_cast %82 : vector<1x8x8xf32> to vector<8x8xf32>
    %84 = vector.broadcast %81 : f32 to vector<8x8xf32>
    %85 = arith.mulf %84, %83 : vector<8x8xf32>
    %86 = arith.addf %80, %85 : vector<8x8xf32>
    %c2_34 = arith.constant 2 : index
    %c3_35 = arith.constant 3 : index
    %87 = memref.load %arg3[%c2_34, %c3_35] : memref<8x4xf32, #tpu.memory_space<smem>>
    %88 = vector.extract_strided_slice %11 {offsets = [3, 0, 0], sizes = [1, 8, 8], strides = [1, 1, 1]} : vector<4x8x8xf32> to vector<1x8x8xf32>
    %89 = vector.shape_cast %88 : vector<1x8x8xf32> to vector<8x8xf32>
    %90 = vector.broadcast %87 : f32 to vector<8x8xf32>
    %91 = arith.mulf %90, %89 : vector<8x8xf32>
    %92 = arith.addf %86, %91 : vector<8x8xf32>
    %c2_36 = arith.constant 2 : index
    %93 = memref.load %arg4[%c2_36] : memref<8xf32, #tpu.memory_space<smem>>
    %94 = vector.broadcast %93 : f32 to vector<8x8xf32>
    %95 = arith.addf %92, %94 : vector<8x8xf32>
    %c0_37 = arith.constant 0 : index
    %c2_38 = arith.constant 2 : index
    %c0_39 = arith.constant 0 : index
    %c0_40 = arith.constant 0 : index
    %96 = vector.load %arg5[%c0_37, %c2_38, %c0_39, %c0_40] : memref<1x8x8x8xf32, #tpu.memory_space<vmem>>, vector<1x1x8x8xf32>
    %97 = vector.shape_cast %96 : vector<1x1x8x8xf32> to vector<8x8xf32>
    %98 = vector.shape_cast %95 : vector<8x8xf32> to vector<1x1x8x8xf32>
    tpu.vector_store %arg5[%c0_37, %c2_38, %c0_39, %c0_40], %98 {strides = array<i32>} : memref<1x8x8x8xf32, #tpu.memory_space<vmem>>, vector<1x1x8x8xf32>,
    %c3_41 = arith.constant 3 : index
    %c0_42 = arith.constant 0 : index
    %99 = memref.load %arg3[%c3_41, %c0_42] : memref<8x4xf32, #tpu.memory_space<smem>>
    %100 = vector.extract_strided_slice %11 {offsets = [0, 0, 0], sizes = [1, 8, 8], strides = [1, 1, 1]} : vector<4x8x8xf32> to vector<1x8x8xf32>
    %101 = vector.shape_cast %100 : vector<1x8x8xf32> to vector<8x8xf32>
    %102 = vector.broadcast %99 : f32 to vector<8x8xf32>
    %103 = arith.mulf %102, %101 : vector<8x8xf32>
    %c3_43 = arith.constant 3 : index
    %c1_44 = arith.constant 1 : index
    %104 = memref.load %arg3[%c3_43, %c1_44] : memref<8x4xf32, #tpu.memory_space<smem>>
    %105 = vector.extract_strided_slice %11 {offsets = [1, 0, 0], sizes = [1, 8, 8], strides = [1, 1, 1]} : vector<4x8x8xf32> to vector<1x8x8xf32>
    %106 = vector.shape_cast %105 : vector<1x8x8xf32> to vector<8x8xf32>
    %107 = vector.broadcast %104 : f32 to vector<8x8xf32>
    %108 = arith.mulf %107, %106 : vector<8x8xf32>
    %109 = arith.addf %103, %108 : vector<8x8xf32>
    %c3_45 = arith.constant 3 : index
    %c2_46 = arith.constant 2 : index
    %110 = memref.load %arg3[%c3_45, %c2_46] : memref<8x4xf32, #tpu.memory_space<smem>>
    %111 = vector.extract_strided_slice %11 {offsets = [2, 0, 0], sizes = [1, 8, 8], strides = [1, 1, 1]} : vector<4x8x8xf32> to vector<1x8x8xf32>
    %112 = vector.shape_cast %111 : vector<1x8x8xf32> to vector<8x8xf32>
    %113 = vector.broadcast %110 : f32 to vector<8x8xf32>
    %114 = arith.mulf %113, %112 : vector<8x8xf32>
    %115 = arith.addf %109, %114 : vector<8x8xf32>
    %c3_47 = arith.constant 3 : index
    %c3_48 = arith.constant 3 : index
    %116 = memref.load %arg3[%c3_47, %c3_48] : memref<8x4xf32, #tpu.memory_space<smem>>
    %117 = vector.extract_strided_slice %11 {offsets = [3, 0, 0], sizes = [1, 8, 8], strides = [1, 1, 1]} : vector<4x8x8xf32> to vector<1x8x8xf32>
    %118 = vector.shape_cast %117 : vector<1x8x8xf32> to vector<8x8xf32>
    %119 = vector.broadcast %116 : f32 to vector<8x8xf32>
    %120 = arith.mulf %119, %118 : vector<8x8xf32>
    %121 = arith.addf %115, %120 : vector<8x8xf32>
    %c3_49 = arith.constant 3 : index
    %122 = memref.load %arg4[%c3_49] : memref<8xf32, #tpu.memory_space<smem>>
    %123 = vector.broadcast %122 : f32 to vector<8x8xf32>
    %124 = arith.addf %121, %123 : vector<8x8xf32>
    %c0_50 = arith.constant 0 : index
    %c3_51 = arith.constant 3 : index
    %c0_52 = arith.constant 0 : index
    %c0_53 = arith.constant 0 : index
    %125 = vector.load %arg5[%c0_50, %c3_51, %c0_52, %c0_53] : memref<1x8x8x8xf32, #tpu.memory_space<vmem>>, vector<1x1x8x8xf32>
    %126 = vector.shape_cast %125 : vector<1x1x8x8xf32> to vector<8x8xf32>
    %127 = vector.shape_cast %124 : vector<8x8xf32> to vector<1x1x8x8xf32>
    tpu.vector_store %arg5[%c0_50, %c3_51, %c0_52, %c0_53], %127 {strides = array<i32>} : memref<1x8x8x8xf32, #tpu.memory_space<vmem>>, vector<1x1x8x8xf32>,
    %c4 = arith.constant 4 : index
    %c0_54 = arith.constant 0 : index
    %128 = memref.load %arg3[%c4, %c0_54] : memref<8x4xf32, #tpu.memory_space<smem>>
    %129 = vector.extract_strided_slice %11 {offsets = [0, 0, 0], sizes = [1, 8, 8], strides = [1, 1, 1]} : vector<4x8x8xf32> to vector<1x8x8xf32>
    %130 = vector.shape_cast %129 : vector<1x8x8xf32> to vector<8x8xf32>
    %131 = vector.broadcast %128 : f32 to vector<8x8xf32>
    %132 = arith.mulf %131, %130 : vector<8x8xf32>
    %c4_55 = arith.constant 4 : index
    %c1_56 = arith.constant 1 : index
    %133 = memref.load %arg3[%c4_55, %c1_56] : memref<8x4xf32, #tpu.memory_space<smem>>
    %134 = vector.extract_strided_slice %11 {offsets = [1, 0, 0], sizes = [1, 8, 8], strides = [1, 1, 1]} : vector<4x8x8xf32> to vector<1x8x8xf32>
    %135 = vector.shape_cast %134 : vector<1x8x8xf32> to vector<8x8xf32>
    %136 = vector.broadcast %133 : f32 to vector<8x8xf32>
    %137 = arith.mulf %136, %135 : vector<8x8xf32>
    %138 = arith.addf %132, %137 : vector<8x8xf32>
    %c4_57 = arith.constant 4 : index
    %c2_58 = arith.constant 2 : index
    %139 = memref.load %arg3[%c4_57, %c2_58] : memref<8x4xf32, #tpu.memory_space<smem>>
    %140 = vector.extract_strided_slice %11 {offsets = [2, 0, 0], sizes = [1, 8, 8], strides = [1, 1, 1]} : vector<4x8x8xf32> to vector<1x8x8xf32>
    %141 = vector.shape_cast %140 : vector<1x8x8xf32> to vector<8x8xf32>
    %142 = vector.broadcast %139 : f32 to vector<8x8xf32>
    %143 = arith.mulf %142, %141 : vector<8x8xf32>
    %144 = arith.addf %138, %143 : vector<8x8xf32>
    %c4_59 = arith.constant 4 : index
    %c3_60 = arith.constant 3 : index
    %145 = memref.load %arg3[%c4_59, %c3_60] : memref<8x4xf32, #tpu.memory_space<smem>>
    %146 = vector.extract_strided_slice %11 {offsets = [3, 0, 0], sizes = [1, 8, 8], strides = [1, 1, 1]} : vector<4x8x8xf32> to vector<1x8x8xf32>
    %147 = vector.shape_cast %146 : vector<1x8x8xf32> to vector<8x8xf32>
    %148 = vector.broadcast %145 : f32 to vector<8x8xf32>
    %149 = arith.mulf %148, %147 : vector<8x8xf32>
    %150 = arith.addf %144, %149 : vector<8x8xf32>
    %c4_61 = arith.constant 4 : index
    %151 = memref.load %arg4[%c4_61] : memref<8xf32, #tpu.memory_space<smem>>
    %152 = vector.broadcast %151 : f32 to vector<8x8xf32>
    %153 = arith.addf %150, %152 : vector<8x8xf32>
    %c0_62 = arith.constant 0 : index
    %c4_63 = arith.constant 4 : index
    %c0_64 = arith.constant 0 : index
    %c0_65 = arith.constant 0 : index
    %154 = vector.load %arg5[%c0_62, %c4_63, %c0_64, %c0_65] : memref<1x8x8x8xf32, #tpu.memory_space<vmem>>, vector<1x1x8x8xf32>
    %155 = vector.shape_cast %154 : vector<1x1x8x8xf32> to vector<8x8xf32>
    %156 = vector.shape_cast %153 : vector<8x8xf32> to vector<1x1x8x8xf32>
    tpu.vector_store %arg5[%c0_62, %c4_63, %c0_64, %c0_65], %156 {strides = array<i32>} : memref<1x8x8x8xf32, #tpu.memory_space<vmem>>, vector<1x1x8x8xf32>,
    %c5 = arith.constant 5 : index
    %c0_66 = arith.constant 0 : index
    %157 = memref.load %arg3[%c5, %c0_66] : memref<8x4xf32, #tpu.memory_space<smem>>
    %158 = vector.extract_strided_slice %11 {offsets = [0, 0, 0], sizes = [1, 8, 8], strides = [1, 1, 1]} : vector<4x8x8xf32> to vector<1x8x8xf32>
    %159 = vector.shape_cast %158 : vector<1x8x8xf32> to vector<8x8xf32>
    %160 = vector.broadcast %157 : f32 to vector<8x8xf32>
    %161 = arith.mulf %160, %159 : vector<8x8xf32>
    %c5_67 = arith.constant 5 : index
    %c1_68 = arith.constant 1 : index
    %162 = memref.load %arg3[%c5_67, %c1_68] : memref<8x4xf32, #tpu.memory_space<smem>>
    %163 = vector.extract_strided_slice %11 {offsets = [1, 0, 0], sizes = [1, 8, 8], strides = [1, 1, 1]} : vector<4x8x8xf32> to vector<1x8x8xf32>
    %164 = vector.shape_cast %163 : vector<1x8x8xf32> to vector<8x8xf32>
    %165 = vector.broadcast %162 : f32 to vector<8x8xf32>
    %166 = arith.mulf %165, %164 : vector<8x8xf32>
    %167 = arith.addf %161, %166 : vector<8x8xf32>
    %c5_69 = arith.constant 5 : index
    %c2_70 = arith.constant 2 : index
    %168 = memref.load %arg3[%c5_69, %c2_70] : memref<8x4xf32, #tpu.memory_space<smem>>
    %169 = vector.extract_strided_slice %11 {offsets = [2, 0, 0], sizes = [1, 8, 8], strides = [1, 1, 1]} : vector<4x8x8xf32> to vector<1x8x8xf32>
    %170 = vector.shape_cast %169 : vector<1x8x8xf32> to vector<8x8xf32>
    %171 = vector.broadcast %168 : f32 to vector<8x8xf32>
    %172 = arith.mulf %171, %170 : vector<8x8xf32>
    %173 = arith.addf %167, %172 : vector<8x8xf32>
    %c5_71 = arith.constant 5 : index
    %c3_72 = arith.constant 3 : index
    %174 = memref.load %arg3[%c5_71, %c3_72] : memref<8x4xf32, #tpu.memory_space<smem>>
    %175 = vector.extract_strided_slice %11 {offsets = [3, 0, 0], sizes = [1, 8, 8], strides = [1, 1, 1]} : vector<4x8x8xf32> to vector<1x8x8xf32>
    %176 = vector.shape_cast %175 : vector<1x8x8xf32> to vector<8x8xf32>
    %177 = vector.broadcast %174 : f32 to vector<8x8xf32>
    %178 = arith.mulf %177, %176 : vector<8x8xf32>
    %179 = arith.addf %173, %178 : vector<8x8xf32>
    %c5_73 = arith.constant 5 : index
    %180 = memref.load %arg4[%c5_73] : memref<8xf32, #tpu.memory_space<smem>>
    %181 = vector.broadcast %180 : f32 to vector<8x8xf32>
    %182 = arith.addf %179, %181 : vector<8x8xf32>
    %c0_74 = arith.constant 0 : index
    %c5_75 = arith.constant 5 : index
    %c0_76 = arith.constant 0 : index
    %c0_77 = arith.constant 0 : index
    %183 = vector.load %arg5[%c0_74, %c5_75, %c0_76, %c0_77] : memref<1x8x8x8xf32, #tpu.memory_space<vmem>>, vector<1x1x8x8xf32>
    %184 = vector.shape_cast %183 : vector<1x1x8x8xf32> to vector<8x8xf32>
    %185 = vector.shape_cast %182 : vector<8x8xf32> to vector<1x1x8x8xf32>
    tpu.vector_store %arg5[%c0_74, %c5_75, %c0_76, %c0_77], %185 {strides = array<i32>} : memref<1x8x8x8xf32, #tpu.memory_space<vmem>>, vector<1x1x8x8xf32>,
    %c6 = arith.constant 6 : index
    %c0_78 = arith.constant 0 : index
    %186 = memref.load %arg3[%c6, %c0_78] : memref<8x4xf32, #tpu.memory_space<smem>>
    %187 = vector.extract_strided_slice %11 {offsets = [0, 0, 0], sizes = [1, 8, 8], strides = [1, 1, 1]} : vector<4x8x8xf32> to vector<1x8x8xf32>
    %188 = vector.shape_cast %187 : vector<1x8x8xf32> to vector<8x8xf32>
    %189 = vector.broadcast %186 : f32 to vector<8x8xf32>
    %190 = arith.mulf %189, %188 : vector<8x8xf32>
    %c6_79 = arith.constant 6 : index
    %c1_80 = arith.constant 1 : index
    %191 = memref.load %arg3[%c6_79, %c1_80] : memref<8x4xf32, #tpu.memory_space<smem>>
    %192 = vector.extract_strided_slice %11 {offsets = [1, 0, 0], sizes = [1, 8, 8], strides = [1, 1, 1]} : vector<4x8x8xf32> to vector<1x8x8xf32>
    %193 = vector.shape_cast %192 : vector<1x8x8xf32> to vector<8x8xf32>
    %194 = vector.broadcast %191 : f32 to vector<8x8xf32>
    %195 = arith.mulf %194, %193 : vector<8x8xf32>
    %196 = arith.addf %190, %195 : vector<8x8xf32>
    %c6_81 = arith.constant 6 : index
    %c2_82 = arith.constant 2 : index
    %197 = memref.load %arg3[%c6_81, %c2_82] : memref<8x4xf32, #tpu.memory_space<smem>>
    %198 = vector.extract_strided_slice %11 {offsets = [2, 0, 0], sizes = [1, 8, 8], strides = [1, 1, 1]} : vector<4x8x8xf32> to vector<1x8x8xf32>
    %199 = vector.shape_cast %198 : vector<1x8x8xf32> to vector<8x8xf32>
    %200 = vector.broadcast %197 : f32 to vector<8x8xf32>
    %201 = arith.mulf %200, %199 : vector<8x8xf32>
    %202 = arith.addf %196, %201 : vector<8x8xf32>
    %c6_83 = arith.constant 6 : index
    %c3_84 = arith.constant 3 : index
    %203 = memref.load %arg3[%c6_83, %c3_84] : memref<8x4xf32, #tpu.memory_space<smem>>
    %204 = vector.extract_strided_slice %11 {offsets = [3, 0, 0], sizes = [1, 8, 8], strides = [1, 1, 1]} : vector<4x8x8xf32> to vector<1x8x8xf32>
    %205 = vector.shape_cast %204 : vector<1x8x8xf32> to vector<8x8xf32>
    %206 = vector.broadcast %203 : f32 to vector<8x8xf32>
    %207 = arith.mulf %206, %205 : vector<8x8xf32>
    %208 = arith.addf %202, %207 : vector<8x8xf32>
    %c6_85 = arith.constant 6 : index
    %209 = memref.load %arg4[%c6_85] : memref<8xf32, #tpu.memory_space<smem>>
    %210 = vector.broadcast %209 : f32 to vector<8x8xf32>
    %211 = arith.addf %208, %210 : vector<8x8xf32>
    %c0_86 = arith.constant 0 : index
    %c6_87 = arith.constant 6 : index
    %c0_88 = arith.constant 0 : index
    %c0_89 = arith.constant 0 : index
    %212 = vector.load %arg5[%c0_86, %c6_87, %c0_88, %c0_89] : memref<1x8x8x8xf32, #tpu.memory_space<vmem>>, vector<1x1x8x8xf32>
    %213 = vector.shape_cast %212 : vector<1x1x8x8xf32> to vector<8x8xf32>
    %214 = vector.shape_cast %211 : vector<8x8xf32> to vector<1x1x8x8xf32>
    tpu.vector_store %arg5[%c0_86, %c6_87, %c0_88, %c0_89], %214 {strides = array<i32>} : memref<1x8x8x8xf32, #tpu.memory_space<vmem>>, vector<1x1x8x8xf32>,
    %c7 = arith.constant 7 : index
    %c0_90 = arith.constant 0 : index
    %215 = memref.load %arg3[%c7, %c0_90] : memref<8x4xf32, #tpu.memory_space<smem>>
    %216 = vector.extract_strided_slice %11 {offsets = [0, 0, 0], sizes = [1, 8, 8], strides = [1, 1, 1]} : vector<4x8x8xf32> to vector<1x8x8xf32>
    %217 = vector.shape_cast %216 : vector<1x8x8xf32> to vector<8x8xf32>
    %218 = vector.broadcast %215 : f32 to vector<8x8xf32>
    %219 = arith.mulf %218, %217 : vector<8x8xf32>
    %c7_91 = arith.constant 7 : index
    %c1_92 = arith.constant 1 : index
    %220 = memref.load %arg3[%c7_91, %c1_92] : memref<8x4xf32, #tpu.memory_space<smem>>
    %221 = vector.extract_strided_slice %11 {offsets = [1, 0, 0], sizes = [1, 8, 8], strides = [1, 1, 1]} : vector<4x8x8xf32> to vector<1x8x8xf32>
    %222 = vector.shape_cast %221 : vector<1x8x8xf32> to vector<8x8xf32>
    %223 = vector.broadcast %220 : f32 to vector<8x8xf32>
    %224 = arith.mulf %223, %222 : vector<8x8xf32>
    %225 = arith.addf %219, %224 : vector<8x8xf32>
    %c7_93 = arith.constant 7 : index
    %c2_94 = arith.constant 2 : index
    %226 = memref.load %arg3[%c7_93, %c2_94] : memref<8x4xf32, #tpu.memory_space<smem>>
    %227 = vector.extract_strided_slice %11 {offsets = [2, 0, 0], sizes = [1, 8, 8], strides = [1, 1, 1]} : vector<4x8x8xf32> to vector<1x8x8xf32>
    %228 = vector.shape_cast %227 : vector<1x8x8xf32> to vector<8x8xf32>
    %229 = vector.broadcast %226 : f32 to vector<8x8xf32>
    %230 = arith.mulf %229, %228 : vector<8x8xf32>
    %231 = arith.addf %225, %230 : vector<8x8xf32>
    %c7_95 = arith.constant 7 : index
    %c3_96 = arith.constant 3 : index
    %232 = memref.load %arg3[%c7_95, %c3_96] : memref<8x4xf32, #tpu.memory_space<smem>>
    %233 = vector.extract_strided_slice %11 {offsets = [3, 0, 0], sizes = [1, 8, 8], strides = [1, 1, 1]} : vector<4x8x8xf32> to vector<1x8x8xf32>
    %234 = vector.shape_cast %233 : vector<1x8x8xf32> to vector<8x8xf32>
    %235 = vector.broadcast %232 : f32 to vector<8x8xf32>
    %236 = arith.mulf %235, %234 : vector<8x8xf32>
    %237 = arith.addf %231, %236 : vector<8x8xf32>
    %c7_97 = arith.constant 7 : index
    %238 = memref.load %arg4[%c7_97] : memref<8xf32, #tpu.memory_space<smem>>
    %239 = vector.broadcast %238 : f32 to vector<8x8xf32>
    %240 = arith.addf %237, %239 : vector<8x8xf32>
    %c0_98 = arith.constant 0 : index
    %c7_99 = arith.constant 7 : index
    %c0_100 = arith.constant 0 : index
    %c0_101 = arith.constant 0 : index
    %241 = vector.load %arg5[%c0_98, %c7_99, %c0_100, %c0_101] : memref<1x8x8x8xf32, #tpu.memory_space<vmem>>, vector<1x1x8x8xf32>
    %242 = vector.shape_cast %241 : vector<1x1x8x8xf32> to vector<8x8xf32>
    %243 = vector.shape_cast %240 : vector<8x8xf32> to vector<1x1x8x8xf32>
    tpu.vector_store %arg5[%c0_98, %c7_99, %c0_100, %c0_101], %243 {strides = array<i32>} : memref<1x8x8x8xf32, #tpu.memory_space<vmem>>, vector<1x1x8x8xf32>,
    return
  }
  func.func @transform_0(%arg0: i32, %arg1: i32) -> (i32, i32, i32, i32, i32, i32) {
    %c0_i32 = arith.constant 0 : i32
    %c0_i32_0 = arith.constant 0 : i32
    %c0_i32_1 = arith.constant 0 : i32
    %c0_i32_2 = arith.constant 0 : i32
    %c0_i32_3 = arith.constant 0 : i32
    return %arg0, %c0_i32, %arg1, %c0_i32_0, %c0_i32_1, %c0_i32_2 : i32, i32, i32, i32, i32, i32
  }
  func.func @transform_1(%arg0: i32, %arg1: i32) -> (i32, i32) {
    %c0_i32 = arith.constant 0 : i32
    %c0_i32_0 = arith.constant 0 : i32
    %c0_i32_1 = arith.constant 0 : i32
    return %c0_i32, %c0_i32_0 : i32, i32
  }
  func.func @transform_2(%arg0: i32, %arg1: i32) -> i32 {
    %c0_i32 = arith.constant 0 : i32
    %c0_i32_0 = arith.constant 0 : i32
    return %c0_i32 : i32
  }
  func.func @transform_3(%arg0: i32, %arg1: i32) -> (i32, i32, i32, i32) {
    %c0_i32 = arith.constant 0 : i32
    %c0_i32_0 = arith.constant 0 : i32
    %c0_i32_1 = arith.constant 0 : i32
    return %arg0, %c0_i32, %arg1, %c0_i32_0 : i32, i32, i32, i32
  }
}

</mosaic_0001>

<bundles_post_ra>
// kernel: my_downsampling_sc.1
= control target key start
LH: loop header
LB: loop body
LE: loop exit
PB: predicated region body
PF: predicated region fallthrough
CT: control target
= control target key end

     0   :  { %s1684_s0 = inlined_call_operand.hbm [shape: f32[2,4,8,2,1,16], index: 0, kind: input, shape index: {}]   ;;  %s1685_s1 = inlined_call_operand.vmem [shape: f32[8,4], index: 1, kind: input, shape index: {}]   ;;  %s1686_s2 = inlined_call_operand.vmem [shape: f32[8], index: 2, kind: input, shape index: {}]   ;;  %s1687_s3 = inlined_call_operand.hbm [shape: f32[2,8,8,8], index: 3, kind: output, shape index: {}]  }
   0x1   :  { %1709 = sst [smem:[#allocation29_spill]] %s1684_s0 }
   0x2   :  { %1710 = sst [smem:[#allocation30_spill]] %s1685_s1 }
   0x3   :  { %1711 = sst [smem:[#allocation31_spill]] %s1686_s2 }
   0x4   :  { %1712 = sst [smem:[#allocation32_spill]] %s1687_s3 }
   0x5   :  { %8 = vsyncpa [#allocation3], 0 }
   0x6   :  { %10 = vsyncpa [#allocation3 + $0x1], 0 }
   0x7   :  { %11 = vsyncpa [#allocation5], 0 }
   0x8   :  { %12 = vsyncpa [#allocation8], 0 }
   0x9   :  { %13 = vsyncpa [#allocation4], 0 }
   0xa   :  { %15 = vsyncpa [#allocation4 + $0x1], 0  ;;  %s1254_s12 = smov 0   ;;  %s1256_s13 = smov 0  }
   0xb   :  { %s1258_s14 = smov 0   ;;  %s1260_s15 = smov 0  }
   0xc   :  { %s1262_s16 = smov 0   ;;  %s1264_s17 = smov 0  }
   0xd LB: > { %1713 = sst [smem:[#allocation14_spill]] %s1201_s12  ;;  %s885_s18 = sadd.s32 4294967295, %s1221_s17   ;;  %s1221_s17 = sphi %s1264_s17, %s21_s17   ;;  %s1217_s16 = sphi %s1262_s16, %s1763_s16   ;;  %s1213_s15 = sphi %s1260_s15, %s1762_s15   ;;  %s1209_s14 = sphi %s1258_s14, %s1761_s14   ;;  %s1205_s13 = sphi %s1256_s13, %s1760_s13   ;;  %s1201_s12 = sphi %s1254_s12, %s1759_s12  }
   0xe   : > { %1714 = sst [smem:[#allocation15_spill]] %s1205_s13  ;;  %s886_s19 = sadd.s32 4294967294, %s1221_s17  }
   0xf   : > { %1715 = sst [smem:[#allocation16_spill]] %s1209_s14  ;;  %s42_s20 = sadd.s32 1, %s1209_s14 }
  0x10   : > { %1716 = sst [smem:[#allocation17_spill]] %s1213_s15  ;;  %p49_p0 = scmp.ne.s32.totalorder %s1209_s14, %s1205_s13 }
  0x11   : > { %1717 = sst [smem:[#allocation18_spill]] %s1217_s16  ;;  %p50_p1 = scmp.eq.s32.totalorder %s1221_s17, 0 }
  0x12   : > { %1718 = sst [smem:[#allocation19_spill]] %s1221_s17  ;;  %p55_p2 = scmp.ne.s32.totalorder %s1205_s13, %s1201_s12 }
  0x13   : > { %p1292_p3 = scmp.eq.s32.totalorder %s885_s18, 0  ;;  %p123_p4 = scmp.eq.s32.totalorder %s885_s18, 1 }
  0x14   : > { %p1296_p5 = por %p50_p1, %p49_p0  ;;  %p129_p6 = scmp.eq.s32.totalorder %s886_s19, 1 }
  0x15   : > { %s1719_s21 = scalar_select %p1292_p3, 1, 0 }
  0x16   : > { %p1302_p7 = por %p1292_p3, %p55_p2  ;;  %p1306_p8 = por %p123_p4, %p49_p0 }
  0x17   : > { %p1310_p9 = por %p129_p6, %p55_p2  ;;  %p887_p10 = scmp.ge.s32.totalorder %s1221_s17, 1 }
  0x18   : > { %s1721_s23 = scalar_select %p1302_p7, 1, 0 }
  0x19   : > { %s1722_s24 = scalar_select %p1306_p8, 1, 0 }
  0x1a   : > { %s1724_s25 = scalar_select %p1310_p9, 1, 0 }
  0x1b   : > { %1723 = sst [smem:[#allocation20_spill]] %s1722_s24  ;;  %p136_p11 = scmp.lt.s32.totalorder %s1221_s17, 3 }
  0x1c   : > { %1725 = sst [smem:[#allocation21_spill]] %s1724_s25  ;;  %s1726_s1 = sld [smem:[#allocation30_spill]] }
  0x1d   : > { %p1319_p12 = pnand %p887_p10, %p136_p11  ;;  %p1010_p0 = scmp.lt.s32.totalorder %s1221_s17, 2 }
  0x1e   : > { %s1728_s2 = sld [smem:[#allocation31_spill]] }
  0x1f   : > { %s1727_s29 = scalar_select %p1319_p12, 1, 0 }
  0x20   : > { %p993_p1 = pneg %p1319_p12  ;;  %p1332_p2 = pnand %p1010_p0, %p1296_p5 }
  0x22   : > { %s149_s28 = sshll.u32 %s1726_s1, 4  ;;  %p1338_p4 = pnand %p993_p1, %p1292_p3  ;;  %s150_s28 = int_to_ptr.vmem [resolvable:$true] %s149_s28 }
  0x23   : > { %s1729_s6 = scalar_select %p1332_p2, 1, 0 }
  0x24   : > { %s160_s5 = sshll.u32 %s1728_s2, 4  ;;  %s1071_s8 = scalar_lea.vmem %s150_s28, 128  ;;  %s161_s5 = int_to_ptr.vmem [resolvable:$true] %s160_s5 }
  0x25   : > { %p1072_p6 = scmp.ne.s32.totalorder %s150_s28, %s1071_s8  ;;  %p1073_p10 = pneg %p1338_p4 }
  0x26   : > { %p1079_p9 = scmp.lt.s32.totalorder %s150_s28, %s150_s28  ;;  %p1080_p8 = scmp.lt.s32.totalorder %s1071_s8, %s1071_s8 }
  0x27   : > { %p1074_p11 = pnand %p1073_p10, %p1072_p6 }
  0x28   : > { %p1081_p7 = por %p1080_p8, %p1079_p9 }
  0x29   : > { %p1075_p13 = pneg %p1074_p11 }
  0x2b   : > { %p1082_p5 = pnand %p1081_p7, %p1075_p13 }
  0x2d   : > { %1085 = shalt.err (!%p1082_p5)
}
  0x2e   : > { %s1223_s9 = smov [#allocation6]   ;;  %s1086_s10 = scalar_lea.vmem %s161_s5, 16 }
  0x2f   : > { %996 = dma.vmem_to_smem (!%p1338_p4), %s150_s28, 128, %s1223_s9, [#allocation5]  }
  0x30   : > { %p1087_p0 = scmp.ne.s32.totalorder %s161_s5, %s1086_s10  ;;  %p1094_p12 = scmp.lt.s32.totalorder %s161_s5, %s161_s5 }
  0x31   : > { %p1095_p2 = scmp.lt.s32.totalorder %s1086_s10, %s1086_s10 }
  0x32   : > { %p1089_p1 = pnand %p1087_p0, %p1073_p10 }
  0x33   : > { %p1096_p6 = por %p1095_p2, %p1094_p12 }
  0x34   : > { %p1090_p3 = pneg %p1089_p1 }
  0x36   : > { %p1097_p11 = pnand %p1096_p6, %p1090_p3 }
  0x38   : > { %1100 = shalt.err (!%p1097_p11)
}
  0x39   : > { %s1224_s11 = smov [#allocation7]   ;;  %s33_s18 = sadd.s32 1, %s1217_s16 }
  0x3a   : > { %999 = dma.vmem_to_smem (!%p1338_p4), %s161_s5, 16, %s1224_s11, [#allocation8]  }
  0x3b   : > { %s171_s19 = sand.u32 1, %s1209_s14   ;;  %p35_p7 = scmp.ge.s32.totalorder %s33_s18, 2 }
  0x3c   : > { %s891_s22 = sshll.u32 %s171_s19, 5  ;;  %s957_s26 = sshll.u32 %s1217_s16, 10 }
  0x3d   : > { %s1765_s18 = smov (%p35_p7, %s33_s18), 0  ;;  %s1732_s0 = sld [smem:[#allocation29_spill]] }
  0x3e   : > { %1731 = sst [smem:[#allocation22_spill]] %s1765_s18  ;;  %s37_s4 = ssub.s32 %s1217_s16, %s1765_s18 }
  0x3f   : > { %s175_s5 = scalar_lea.vmem [#allocation2], %s891_s22  ;;  %p40_p3 = scmp.eq.s32.totalorder %s37_s4, 0 }
  0x40   : > { %s185_s7 = sshll.u32 %s175_s5, 4  ;;  %s1367_s9 = scalar_lea.sflag [#allocation3], %s171_s19  ;;  %s1360_s7 = int_to_ptr.vmem [resolvable:$true] %s185_s7 }
  0x41   : > { %s1365_s8 = scalar_select %p40_p3, %s1209_s14, %s42_s20  }
  0x42   : > { %p1734_p9 = scmp.ne.s32.totalorder %s1729_s6, 0 }
  0x43   : > { %s1356_s30 = scalar_lea.hbm %s1732_s0, %s957_s26  ;;  %1733 = sst [smem:[#allocation23_spill]] %s1365_s8 }
  0x44   : > { %s1101_s10 = scalar_lea.hbm %s1356_s30, 512  ;;  %p1103_p12 = pneg %p1734_p9 }
  0x45   : > { %p1102_p8 = scmp.ne.s32.totalorder %s1356_s30, %s1101_s10  ;;  %s1106_s22 = scalar_lea.hbm %s1732_s0, 2048 }
  0x46   : > { %p1107_p4 = scmp.lt.u32.totalorder %s1356_s30, %s1732_s0  ;;  %p1108_p10 = scmp.lt.u32.totalorder %s1106_s22, %s1101_s10 }
  0x47   : > { %p1104_p13 = pnand %p1103_p12, %p1102_p8  ;;  %p1110_p0 = scmp.lt.u32.totalorder %s1101_s10, %s1356_s30 }
  0x48   : > { %p1109_p5 = por %p1108_p10, %p1107_p4 }
  0x49   : > { %p1105_p2 = pneg %p1104_p13 }
  0x4a   : > { %p1111_p1 = por %p1110_p0, %p1109_p5 }
  0x4c   : > { %p1112_p6 = pnand %p1111_p1, %p1105_p2 }
  0x4e   : > { %1115 = shalt.err (!%p1112_p6)
}
  0x4f   : > { %s1116_s20 = scalar_lea.vmem %s1360_s7, 512  ;;  %s1225_s19 = smov [#allocation2]  }
  0x50   : > { %p1117_p11 = scmp.ne.s32.totalorder %s1360_s7, %s1116_s20  ;;  %s1121_s4 = sshll.u32 %s1225_s19, 4  ;;  %s1122_s4 = int_to_ptr.vmem [resolvable:$false] %s1121_s4 }
  0x51   : > { %s1123_s5 = scalar_lea.vmem %s1122_s4, 1024  ;;  %p1124_p8 = scmp.lt.s32.totalorder %s1360_s7, %s1122_s4 }
  0x52   : > { %p1119_p7 = pnand %p1117_p11, %p1103_p12  ;;  %p1125_p13 = scmp.lt.s32.totalorder %s1123_s5, %s1116_s20 }
  0x54   : > { %p1120_p3 = pneg %p1119_p7  ;;  %p1126_p4 = por %p1125_p13, %p1124_p8 }
  0x56   : > { %p1127_p10 = pnand %p1126_p4, %p1120_p3 }
  0x58   : > { %1130 = shalt.err (!%p1127_p10)
}
  0x59   : > { %s1226_s10 = smov 32   ;;  %s1227_s11 = smov 16  }
  0x5a   : > { %s1228_s26 = smov 1   ;;  %p1735_p12 = scmp.ne.s32.totalorder %s1727_s29, 0 }
  0x5b   : > { %1003 = dma.hbm_to_vmem [thread:$0]  (!%p1734_p9), %s1356_s30, 512, %s1360_s7, %s1367_s9, %s1226_s10, %s1227_s11, %s1228_s26  }
  0x5c   : > { %197 = sbr.rel (%p1735_p12) target bundleno = 375 (0x177), region = 32 }
  0x63   : > { %s1398_s22 = sand.u32 1, %s1205_s13   ;;  %p1737_p2 = scmp.ne.s32.totalorder %s1721_s23, 0 }
  0x64   : > { %1736 = sst [smem:[#allocation24_spill]] %s1398_s22  ;;  %s895_s27 = sshll.u32 %s1398_s22, 5 }
  0x65   : > { %s200_s28 = scalar_lea.sflag [#allocation3], %s1398_s22  ;;  %s1402_s20 = scalar_lea.vmem [#allocation2], %s895_s27 }
  0x66   : > { %1184 = dma.done.wait (%p1737_p2), %s200_s28, 512  }
  0x67   : > { %1186 = vsyncadd (%p1737_p2), %s200_s28, 4294966784  ;;  %p1738_p9 = scmp.ne.s32.totalorder %s1719_s21, 0 }
  0x69   : > { %1188 = dma.done.wait (%p1738_p9), [#allocation5], 128  }
  0x6a   : > { %1190 = vsyncadd (%p1738_p9), [#allocation5], 4294967168 }
  0x6b   : > { %1192 = dma.done.wait (%p1738_p9), [#allocation8], 16  }
  0x6c   : > { %1194 = vsyncadd (%p1738_p9), [#allocation8], 4294967280 }
  0x6d   : > { %216 = sfence }
  0x6e   : > { %v268_v0 = vlaneseq  ;;  %v236_v1 = vld [vmem:[%s1402_s20] sm:$0x1]  ;;  %v1229_v2 = vmov 1966171168   ;;  %v237_v4 = vld [vmem:[%s1402_s20 + $0x1] sm:$0x1] }
  0x6f   : > { %v317_v3 = vunpack.c.l.s4 %v1229_v2  ;;  %v238_v5 = vld [vmem:[%s1402_s20 + $0x2] sm:$0x1]  ;;  %v239_v6 = vld [vmem:[%s1402_s20 + $0x3] sm:$0x1]  ;;  %v240_v9 = vld [vmem:[%s1402_s20 + $0x4] sm:$0x1]  ;;  %v312_v14 = vcombine.low %v236_v1, %v237_v4 }
  0x70   : > { %v269_v7 = vshrl.u32 %v268_v0, 7  ;;  %v272_v8 = vand.u32 127, %v268_v0  ;;  %v241_v10 = vld [vmem:[%s1402_s20 + $0x5] sm:$0x1]  ;;  %v242_v12 = vld [vmem:[%s1402_s20 + $0x6] sm:$0x1]  ;;  %v313_v15 = vcombine.low %v238_v5, %v239_v6 }
  0x71   : > { %v318_v11 = vunpack.c.0.s8 %v317_v3  ;;  %v243_v13 = vld [vmem:[%s1402_s20 + $0x7] sm:$0x1]  ;;  %v314_v16 = vcombine.low %v240_v9, %v241_v10  ;;  %vm508_vm0 = vcmask 130048   ;;  %v244_v20 = vld [vmem:[%s1402_s20 + $0x8] sm:$0x1]  ;;  %s1490_s21 = sld [smem:[#allocation6 + $0x1]] }
  0x72   : > { %v270_v17 = vadd.s32 8, %v269_v7  ;;  %v273_v18 = vmul.u32 2, %v272_v8  ;;  %v315_v19 = vcombine.low %v242_v12, %v243_v13  ;;  %v245_v21 = vld [vmem:[%s1402_s20 + $0x9] sm:$0x1]  ;;  %v246_v23 = vld [vmem:[%s1402_s20 + $0xa] sm:$0x1] }
  0x73   : > { %v1426_v22 = vsub.s32 %v318_v11, %v269_v7  ;;  %v247_v24 = vld [vmem:[%s1402_s20 + $0xb] sm:$0x1]  ;;  %v248_v25 = vld [vmem:[%s1402_s20 + $0xc] sm:$0x1]  ;;  %v361_v26 = vcombine.low %v244_v20, %v245_v21  ;;  %v249_v27 = vld [vmem:[%s1402_s20 + $0xd] sm:$0x1] }
  0x74   : > { %vm274_vm1 = vcmp.eq.s32.totalorder %v269_v7, %v273_v18  ;;  %vm275_vm2 = vcmp.eq.s32.totalorder %v270_v17, %v273_v18  ;;  %v250_v28 = vld [vmem:[%s1402_s20 + $0xe] sm:$0x1]  ;;  %v251_v29 = vld [vmem:[%s1402_s20 + $0xf] sm:$0x1]  ;;  %v362_v30 = vcombine.low %v246_v23, %v247_v24  ;;  %v252_v36 = vld [vmem:[%s1402_s20 + $0x10] sm:$0x1]  ;;  %v363_v39 = vcombine.low %v248_v25, %v249_v27 }
  0x75   : > { %vm1434_vm3 = vmpackc.low %vm275_vm2, %vm274_vm1  ;;  %v322_v32 = vrot.slane %v312_v14, %v1426_v22  ;;  %v329_v33 = vrot.slane %v313_v15, %v1426_v22  ;;  %v336_v34 = vrot.slane %v314_v16, %v1426_v22  ;;  %v343_v35 = vrot.slane %v315_v19, %v1426_v22  ;;  %v253_v37 = vld [vmem:[%s1402_s20 + $0x11] sm:$0x1]  ;;  %v254_v42 = vld [vmem:[%s1402_s20 + $0x12] sm:$0x1]  ;;  %s1492_s23 = sld [smem:[#allocation6]]  ;;  %s1494_s29 = sld [smem:[#allocation6 + $0x81]] }
  0x76   : > { %v1230_v38 = vmov 1.0|1.0   ;;  %v364_v40 = vcombine.low %v250_v28, %v251_v29  ;;  %v371_v41 = vrot.slane %v361_v26, %v1426_v22  ;;  %v255_v43 = vld [vmem:[%s1402_s20 + $0x13] sm:$0x1]  ;;  %v256_v44 = vld [vmem:[%s1402_s20 + $0x14] sm:$0x1]  ;;  %v378_v47 = vrot.slane %v362_v30, %v1426_v22 }
  0x77   : > { %976 = vmatprep.subr.msk.bf16.mxu0 %vm1434_vm3, %v1230_v38  ;;  %979 = vmatprep.subr.msk.bf16.mxu1 %vm1434_vm3, %v1230_v38  ;;  %v344_v45 = vcombine.low %v322_v32, %v329_v33  ;;  %v345_v46 = vcombine.low %v336_v34, %v343_v35  ;;  %v257_v48 = vld [vmem:[%s1402_s20 + $0x15] sm:$0x1]  ;;  %v258_v49 = vld [vmem:[%s1402_s20 + $0x16] sm:$0x1]  ;;  %v259_v50 = vld [vmem:[%s1402_s20 + $0x17] sm:$0x1]  ;;  %v385_v51 = vrot.slane %v363_v39, %v1426_v22  ;;  %v606_v32 = vstv %s1490_s21 }
  0x78   : > { %978 = vmatpush3.bf16.msk.msra.mxu0 %vm1434_vm3, %v1230_v38  ;;  %980 = vmatpush3.bf16.msk.msra.mxu1 %vm1434_vm3, %v1230_v38  ;;  %v392_v52 = vrot.slane %v364_v40, %v1426_v22  ;;  %v410_v53 = vcombine.low %v252_v36, %v253_v37  ;;  %v411_v54 = vcombine.low %v254_v42, %v255_v43  ;;  %v260_v55 = vld [vmem:[%s1402_s20 + $0x18] sm:$0x1]  ;;  %v261_v56 = vld [vmem:[%s1402_s20 + $0x19] sm:$0x1]  ;;  %v262_v61 = vld [vmem:[%s1402_s20 + $0x1a] sm:$0x1] }
  0x79   : > { %v352_v57 = vrot.slane %v344_v45, %v1426_v22  ;;  %v359_v58 = vrot.slane %v345_v46, %v1426_v22  ;;  %v393_v59 = vcombine.low %v371_v41, %v378_v47  ;;  %v412_v60 = vcombine.low %v256_v44, %v257_v48  ;;  %v263_v62 = vld [vmem:[%s1402_s20 + $0x1b] sm:$0x1]  ;;  %v264_v63 = vld [vmem:[%s1402_s20 + $0x1c] sm:$0x1]  ;;  %v265_v4 = vld [vmem:[%s1402_s20 + $0x1d] sm:$0x1] }
  0x7a   : > { %v394_v0 = vcombine.low %v385_v51, %v392_v52  ;;  %v413_v1 = vcombine.low %v258_v49, %v259_v50  ;;  %v420_v2 = vrot.slane %v410_v53, %v1426_v22  ;;  %v427_v3 = vrot.slane %v411_v54, %v1426_v22  ;;  %v266_v5 = vld [vmem:[%s1402_s20 + $0x1e] sm:$0x1]  ;;  %v267_v6 = vld [vmem:[%s1402_s20 + $0x1f] sm:$0x1]  ;;  %s1496_s6 = sld [smem:[#allocation6 + $0x80]]  ;;  %s1500_s7 = sld [smem:[#allocation6 + $0x101]] }
  0x7b   : > { %v360_v7 = vcombine.low %v352_v57, %v359_v58  ;;  %v401_v8 = vrot.slane %v393_v59, %v1426_v22  ;;  %v434_v9 = vrot.slane %v412_v60, %v1426_v22  ;;  %v459_v10 = vcombine.low %v260_v55, %v261_v56  ;;  %s1498_s30 = sld [smem:[#allocation6 + $0x100]]  ;;  %s1504_s19 = sld [smem:[#allocation6 + $0x181]] }
  0x7c   : > { %v408_v11 = vrot.slane %v394_v0, %v1426_v22  ;;  %v441_v12 = vrot.slane %v413_v1, %v1426_v22  ;;  %v442_v13 = vcombine.low %v420_v2, %v427_v3  ;;  %v460_v14 = vcombine.low %v262_v61, %v263_v62  ;;  %s1502_s9 = sld [smem:[#allocation6 + $0x180]]  ;;  %s1508_s5 = sld [smem:[#allocation6 + $0x201]] }
  0x7d   : > { %969 = vmatprep.mubr.msk.f32.mxu0 %vm508_vm0, %v360_v7  ;;  %v461_v15 = vcombine.low %v264_v63, %v265_v4  ;;  %v462_v16 = vcombine.low %v266_v5, %v267_v6  ;;  %v469_v17 = vrot.slane %v459_v10, %v1426_v22  ;;  %s1506_s4 = sld [smem:[#allocation6 + $0x200]]  ;;  %s1512_s11 = sld [smem:[#allocation6 + $0x281]]  ;;  %v626_v33 = vstv %s1494_s29 }
  0x7e   : > { %v409_v18 = vcombine.low %v401_v8, %v408_v11  ;;  %v443_v19 = vcombine.low %v434_v9, %v441_v12  ;;  %v450_v20 = vrot.slane %v442_v13, %v1426_v22  ;;  %v476_v21 = vrot.slane %v460_v14, %v1426_v22  ;;  %s1510_s10 = sld [smem:[#allocation6 + $0x280]]  ;;  %s1516_s27 = sld [smem:[#allocation6 + $0x301]] }
  0x7f   : > { %v483_v23 = vrot.slane %v461_v15, %v1426_v22  ;;  %v490_v24 = vrot.slane %v462_v16, %v1426_v22  ;;  %s1514_s26 = sld [smem:[#allocation6 + $0x300]]  ;;  %s1520_s20 = sld [smem:[#allocation6 + $0x381]]  ;;  %vm620_vm4 = vcmask 64512  }
  0x80   : > { %970 = vmatmul.mubr.msk.f32.vlgmr.msra.gmra.mrb[0].mxu0 %vm508_vm0, %v409_v18  ;;  %v457_v25 = vrot.slane %v443_v19, %v1426_v22  ;;  %v491_v26 = vcombine.low %v469_v17, %v476_v21  ;;  %s1518_s28 = sld [smem:[#allocation6 + $0x380]]  ;;  %s1522_s0 = sld [smem:[#allocation6 + $0x3]]  ;;  %v623_v34 = vstv %s1496_s6  ;;  %v646_v36 = vstv %s1500_s7 }
  0x81   : > { %v492_v27 = vcombine.low %v483_v23, %v490_v24  ;;  %s1524_s1 = sld [smem:[#allocation6 + $0x83]]  ;;  %s1538_s17 = sld [smem:[#allocation6 + $0x2]]  ;;  %v643_v35 = vstv %s1498_s30  ;;  %v666_v38 = vstv %s1504_s19 }
  0x82   : > { %v458_v28 = vcombine.low %v450_v20, %v457_v25  ;;  %v499_v29 = vrot.slane %v491_v26, %v1426_v22  ;;  %s1526_s2 = sld [smem:[#allocation6 + $0x103]]  ;;  %s1540_s25 = sld [smem:[#allocation7]]  ;;  %v663_v37 = vstv %s1502_s9  ;;  %v686_v40 = vstv %s1508_s5 }
  0x83   : > { %v506_v30 = vrot.slane %v492_v27, %v1426_v22  ;;  %s1528_s18 = sld [smem:[#allocation6 + $0x183]]  ;;  %s1542_s12 = sld [smem:[#allocation6 + $0x82]]  ;;  %v603_v22 = vstv %s1492_s23  ;;  %v683_v39 = vstv %s1506_s4  ;;  %v706_v42 = vstv %s1512_s11 }
  0x84   : > { %972 = vmatprep.mubr.msk.f32.mxu1 %vm508_vm0, %v458_v28  ;;  %s1530_s16 = sld [smem:[#allocation6 + $0x203]]  ;;  %s1544_s3 = sld [smem:[#allocation7 + $0x1]]  ;;  %v703_v41 = vstv %s1510_s10  ;;  %v726_v44 = vstv %s1516_s27 }
  0x85   : > { %v507_v31 = vcombine.low %v499_v29, %v506_v30  ;;  %s1532_s8 = sld [smem:[#allocation6 + $0x283]]  ;;  %s1546_s24 = sld [smem:[#allocation6 + $0x102]]  ;;  %v723_v43 = vstv %s1514_s26  ;;  %v746_v46 = vstv %s1520_s20 }
  0x86   : > { %s1534_s14 = sld [smem:[#allocation6 + $0x303]]  ;;  %s1548_s15 = sld [smem:[#allocation7 + $0x2]]  ;;  %v743_v45 = vstv %s1518_s28  ;;  %v614_v47 = vstv %s1522_s0 }
  0x87   : > { %973 = vmatmul.mubr.msk.f32.vlgmr.msra.gmra.mrb[0].mxu1 %vm508_vm0, %v507_v31  ;;  %s1536_s13 = sld [smem:[#allocation6 + $0x383]]  ;;  %s1550_s22 = sld [smem:[#allocation6 + $0x182]]  ;;  %v634_v48 = vstv %s1524_s1 }
  0x88   : > { %1741 = sst [smem:[#allocation25_spill]] %s1538_s17  ;;  %v654_v49 = vstv %s1526_s2  ;;  %s1583_s30 = sld [smem:[#allocation7 + $0x5]] }
  0x89   : > { %1742 = sst [smem:[#allocation26_spill]] %s1540_s25  ;;  %s1552_s17 = sld [smem:[#allocation7 + $0x3]]  ;;  %v674_v50 = vstv %s1528_s18  ;;  %v630_v57 = vstv %s1542_s12 }
  0x8a   : > { %s1554_s25 = sld [smem:[#allocation6 + $0x202]]  ;;  %s1745_s21 = sld [smem:[#allocation25_spill]]  ;;  %v694_v51 = vstv %s1530_s16  ;;  %v638_v58 = vstv %s1544_s3 }
  0x8b   : > { %1743 = sst [smem:[#allocation27_spill]] %s1546_s24  ;;  %s1559_s24 = sld [smem:[#allocation7 + $0x4]]  ;;  %v714_v52 = vstv %s1532_s8 }
  0x8c   : > { %1744 = sst [smem:[#allocation28_spill]] %s1548_s15  ;;  %s1561_s15 = sld [smem:[#allocation6 + $0x282]]  ;;  %v734_v53 = vstv %s1534_s14 }
  0x8d   : > { %s1746_s23 = sld [smem:[#allocation26_spill]]  ;;  %s1747_s29 = sld [smem:[#allocation27_spill]]  ;;  %v754_v54 = vstv %s1536_s13  ;;  %v670_v61 = vstv %s1550_s22 }
  0x8e   : > { %s1748_s6 = sld [smem:[#allocation28_spill]]  ;;  %s1589_s7 = sld [smem:[#allocation6 + $0x302]]  ;;  %v718_v27 = vstv %s1583_s30 }
  0x8f   : > { %s1591_s0 = sld [smem:[#allocation7 + $0x6]]  ;;  %s1597_s1 = sld [smem:[#allocation6 + $0x382]]  ;;  %v678_v63 = vstv %s1552_s17 }
  0x90   : > { %v610_v55 = vstv %s1745_s21  ;;  %s1599_s2 = sld [smem:[#allocation7 + $0x7]]  ;;  %v690_v0 = vstv %s1554_s25  ;;  %s1749_s12 = sld [smem:[#allocation24_spill]] }
  0x91   : > { %v698_v1 = vstv %s1559_s24  ;;  %s1750_s14 = sld [smem:[#allocation17_spill]]  ;;  %s1751_s18 = sld [smem:[#allocation20_spill]] }
  0x92   : > { %v710_v2 = vstv %s1561_s15  ;;  %s1752_s9 = sld [smem:[#allocation32_spill]]  ;;  %s1231_s24 = smov [#allocation9]  }
  0x93   : > { %v618_v56 = vstv %s1746_s23  ;;  %v650_v59 = vstv %s1747_s29  ;;  %s1135_s4 = sshll.u32 %s1231_s24, 4  ;;  %s1136_s4 = int_to_ptr.vmem [resolvable:$false] %s1135_s4 }
  0x94   : > { %v658_v60 = vstv %s1748_s6  ;;  %v730_v28 = vstv %s1589_s7  ;;  %s1137_s5 = scalar_lea.vmem %s1136_s4, 2048 }
  0x95   : > { %v738_v31 = vstv %s1591_s0 }
  0x96   : > { %s898_s13 = sshll.u32 %s1749_s12, 6  ;;  %s763_s3 = scalar_lea.sflag [#allocation4], %s1749_s12 }
  0x97   : > { %s958_s15 = sshll.u32 %s1750_s14, 10  ;;  %s234_s16 = scalar_lea.vmem [#allocation9], %s898_s13 }
  0x98   : > { %s777_s25 = sshll.u32 %s234_s16, 4  ;;  %s1625_s19 = scalar_lea.hbm %s1752_s9, %s958_s15  ;;  %s1627_s25 = int_to_ptr.vmem [resolvable:$true] %s777_s25 }
  0x99   : > { %s1131_s17 = scalar_lea.vmem %s1627_s25, 1024  ;;  %p1753_p0 = scmp.ne.s32.totalorder %s1751_s18, 0 }
  0x9a   : > { %p1132_p5 = scmp.ne.s32.totalorder %s1627_s25, %s1131_s17  ;;  %p1138_p11 = scmp.lt.s32.totalorder %s1627_s25, %s1136_s4 }
  0x9b   : > { %p1139_p7 = scmp.lt.s32.totalorder %s1137_s5, %s1131_s17 }
  0x9c   : > { %p1133_p1 = pnand %p1132_p5, %p1753_p0 }
  0x9d   : > { %p1140_p3 = por %p1139_p7, %p1138_p11 }
  0x9e   : > { %p1134_p6 = pneg %p1133_p1 }
  0xa0   : > { %p1141_p8 = pnand %p1140_p3, %p1134_p6 }
 0x153   : > { %v971_v62 = vpop.f32.mrb[0].mxu0 }
 0x154   : > { %v583_v3 = vpop.f32.mrb[1].mxu0  ;;  %v607_v4 = vmul.f32 %v971_v62, %v606_v32  ;;  %v627_v5 = vmul.f32 %v971_v62, %v626_v33  ;;  %v647_v6 = vmul.f32 %v971_v62, %v646_v36  ;;  %v667_v7 = vmul.f32 %v971_v62, %v666_v38 }
 0x155   : > { %v604_v8 = vmul.f32 %v603_v22, %v583_v3  ;;  %v624_v9 = vmul.f32 %v623_v34, %v583_v3  ;;  %v644_v10 = vmul.f32 %v643_v35, %v583_v3  ;;  %v664_v11 = vmul.f32 %v663_v37, %v583_v3 }
 0x156   : > { %v684_v12 = vmul.f32 %v683_v39, %v583_v3  ;;  %v687_v13 = vmul.f32 %v971_v62, %v686_v40  ;;  %v704_v14 = vmul.f32 %v703_v41, %v583_v3  ;;  %v707_v15 = vmul.f32 %v971_v62, %v706_v42 }
 0x157   : > { %v608_v16 = vadd.f32 %v607_v4, %v604_v8  ;;  %v628_v17 = vadd.f32 %v627_v5, %v624_v9  ;;  %v648_v18 = vadd.f32 %v647_v6, %v644_v10  ;;  %v668_v19 = vadd.f32 %v667_v7, %v664_v11 }
 0x158   : > { %v688_v20 = vadd.f32 %v687_v13, %v684_v12  ;;  %v708_v21 = vadd.f32 %v707_v15, %v704_v14  ;;  %v724_v23 = vmul.f32 %v723_v43, %v583_v3  ;;  %v727_v24 = vmul.f32 %v971_v62, %v726_v44 }
 0x159   : > { %v744_v25 = vmul.f32 %v743_v45, %v583_v3  ;;  %v747_v26 = vmul.f32 %v971_v62, %v746_v46  ;;  %v750_v22 = vstv %s1597_s1  ;;  %v758_v32 = vstv %s1599_s2 }
 0x15a   : > { %v728_v29 = vadd.f32 %v727_v24, %v724_v23  ;;  %v974_v30 = vpop.f32.mrb[0].mxu1 }
 0x15b   : > { %v748_v33 = vadd.f32 %v747_v26, %v744_v25  ;;  %v615_v34 = vmul.f32 %v974_v30, %v614_v47  ;;  %v635_v35 = vmul.f32 %v974_v30, %v634_v48  ;;  %v655_v36 = vmul.f32 %v974_v30, %v654_v49  ;;  %v593_v37 = vpop.f32.mrb[1].mxu1 }
 0x15c   : > { %v675_v38 = vmul.f32 %v974_v30, %v674_v50  ;;  %v695_v39 = vmul.f32 %v974_v30, %v694_v51  ;;  %v715_v40 = vmul.f32 %v974_v30, %v714_v52  ;;  %v735_v41 = vmul.f32 %v974_v30, %v734_v53 }
 0x15d   : > { %v755_v42 = vmul.f32 %v974_v30, %v754_v54  ;;  %v611_v43 = vmul.f32 %v610_v55, %v593_v37  ;;  %v631_v44 = vmul.f32 %v630_v57, %v593_v37  ;;  %v651_v45 = vmul.f32 %v650_v59, %v593_v37 }
 0x15e   : > { %v671_v46 = vmul.f32 %v670_v61, %v593_v37  ;;  %v691_v62 = vmul.f32 %v690_v0, %v593_v37  ;;  %v711_v3 = vmul.f32 %v710_v2, %v593_v37  ;;  %v731_v4 = vmul.f32 %v730_v28, %v593_v37 }
 0x15f   : > { %v612_v5 = vadd.f32 %v611_v43, %v608_v16  ;;  %v632_v6 = vadd.f32 %v631_v44, %v628_v17  ;;  %v652_v47 = vadd.f32 %v651_v45, %v648_v18  ;;  %v751_v48 = vmul.f32 %v750_v22, %v593_v37 }
 0x160   : > { %v672_v49 = vadd.f32 %v671_v46, %v668_v19  ;;  %v692_v50 = vadd.f32 %v691_v62, %v688_v20  ;;  %v712_v51 = vadd.f32 %v711_v3, %v708_v21  ;;  %v732_v52 = vadd.f32 %v731_v4, %v728_v29 }
 0x161   : > { %v616_v53 = vadd.f32 %v615_v34, %v612_v5  ;;  %v636_v54 = vadd.f32 %v635_v35, %v632_v6  ;;  %v656_v55 = vadd.f32 %v655_v36, %v652_v47  ;;  %v752_v57 = vadd.f32 %v751_v48, %v748_v33 }
 0x162   : > { %v676_v59 = vadd.f32 %v675_v38, %v672_v49  ;;  %v696_v61 = vadd.f32 %v695_v39, %v692_v50  ;;  %v716_v0 = vadd.f32 %v715_v40, %v712_v51  ;;  %v736_v2 = vadd.f32 %v735_v41, %v732_v52 }
 0x163   : > { %v619_v7 = vadd.f32 %v618_v56, %v616_v53  ;;  %v639_v8 = vadd.f32 %v638_v58, %v636_v54  ;;  %v659_v9 = vadd.f32 %v658_v60, %v656_v55  ;;  %v756_v10 = vadd.f32 %v755_v42, %v752_v57 }
 0x164   : > { %v679_v11 = vadd.f32 %v678_v63, %v676_v59  ;;  %v699_v12 = vadd.f32 %v698_v1, %v696_v61  ;;  %v719_v13 = vadd.f32 %v718_v27, %v716_v0  ;;  %v739_v14 = vadd.f32 %v738_v31, %v736_v2 }
 0x165   : > { %621 = vst.msk [vmem:[%s234_s16] sm:$0xff] %vm620_vm4, %v619_v7  ;;  %915 = vst.msk [vmem:[%s234_s16 + $0x8] sm:$0xff] %vm620_vm4, %v639_v8  ;;  %v759_v56 = vadd.f32 %v758_v32, %v756_v10 }
 0x166   : > { %921 = vst.msk [vmem:[%s234_s16 + $0x10] sm:$0xff] %vm620_vm4, %v659_v9  ;;  %927 = vst.msk [vmem:[%s234_s16 + $0x18] sm:$0xff] %vm620_vm4, %v679_v11 }
 0x167   : > { %933 = vst.msk [vmem:[%s234_s16 + $0x20] sm:$0xff] %vm620_vm4, %v699_v12  ;;  %939 = vst.msk [vmem:[%s234_s16 + $0x28] sm:$0xff] %vm620_vm4, %v719_v13 }
 0x168   : > { %945 = vst.msk [vmem:[%s234_s16 + $0x30] sm:$0xff] %vm620_vm4, %v739_v14  ;;  %951 = vst.msk [vmem:[%s234_s16 + $0x38] sm:$0xff] %vm620_vm4, %v759_v56 }
 0x169   : > { %1144 = shalt.err (!%p1141_p8)
}
 0x16a   : > { %s1145_s10 = scalar_lea.hbm %s1625_s19, 1024  ;;  %s1149_s27 = scalar_lea.hbm %s1752_s9, 2048 }
 0x16b   : > { %p1146_p13 = scmp.ne.s32.totalorder %s1625_s19, %s1145_s10  ;;  %p1150_p12 = scmp.lt.u32.totalorder %s1625_s19, %s1752_s9 }
 0x16c   : > { %p1151_p2 = scmp.lt.u32.totalorder %s1149_s27, %s1145_s10  ;;  %p1153_p5 = scmp.lt.u32.totalorder %s1145_s10, %s1625_s19 }
 0x16d   : > { %p1147_p4 = pnand %p1146_p13, %p1753_p0 }
 0x16e   : > { %p1152_p9 = por %p1151_p2, %p1150_p12 }
 0x16f   : > { %p1148_p10 = pneg %p1147_p4 }
 0x170   : > { %p1154_p1 = por %p1153_p5, %p1152_p9 }
 0x172   : > { %p1155_p6 = pnand %p1154_p1, %p1148_p10 }
 0x174   : > { %1158 = shalt.err (!%p1155_p6)
}
 0x175   : > { %s1232_s21 = smov 128   ;;  %s1233_s23 = smov 8  }
 0x176   : > { %991 = dma.vmem_to_hbm [thread:$0]  (%p1753_p0), %s1627_s25, 1024, %s1625_s19, %s763_s3, %s1232_s21, %s1232_s21, %s1233_s23  }
 0x177 PF: > { %s1754_s29 = sld [smem:[#allocation14_spill]]  ;;  %s1755_s6 = sld [smem:[#allocation21_spill]] }
 0x178   : > { %s1756_s30 = sld [smem:[#allocation19_spill]] }
 0x17d   : > { %s792_s7 = sand.u32 1, %s1754_s29   ;;  %p1757_p11 = scmp.ne.s32.totalorder %s1755_s6, 0 }
 0x17e   : > { %p1758_p7 = scmp.ge.s32.totalorder %s1756_s30, 2  ;;  %s793_s0 = scalar_lea.sflag [#allocation4], %s792_s7 }
 0x180   : > { %p1005_p3 = pnand %p1758_p7, %p1757_p11 }
 0x182   : > { %1196 = dma.done.wait (!%p1005_p3), %s793_s0, 1024  }
 0x183   : > { %1198 = vsyncadd (!%p1005_p3), %s793_s0, 4294966272  ;;  %s21_s17 = sadd.s32 1, %s1756_s30   ;;  %s1759_s12 = sld [smem:[#allocation15_spill]] }
 0x184   : > { %p18_p8 = scmp.ge.s32.totalorder %s21_s17, 4   ;;  %s1760_s13 = sld [smem:[#allocation16_spill]] }
 0x185   : > { %s1761_s14 = sld [smem:[#allocation23_spill]]  ;;  %s1762_s15 = sld [smem:[#allocation18_spill]] }
 0x186   : > { %s1763_s16 = sld [smem:[#allocation22_spill]]  ;;  %20 = sbr.rel (!%p18_p8) target bundleno = 13 (0xd), region = 93 }
 0x18d   :  { %798 = vsyncpa [#allocation3], 1 }
 0x18e   :  { %800 = vsyncpa [#allocation3 + $0x1], 1 }
 0x18f   :  { %801 = vsyncpa [#allocation4], 1 }
 0x190   :  { %803 = vsyncpa [#allocation4 + $0x1], 1 }
 0x191   :  { %804 = vsyncpa [#allocation5], 1 }
 0x192   :  { %806 = vsyncpa [#allocation5 + $0x1], 1 }
 0x193   :  { %807 = vsyncpa [#allocation8], 1 }

</bundles_post_ra>
